<compile_context>
chip_gen: v6e
topology: v6e:2x2x1
jax: 0.10.0
libtpu: 0.0.40
codegen_flags: <defaults>
</compile_context>

<pallas_src>
import jax
import jax.numpy as jnp
from jax.experimental import pallas as pl
from jax.experimental.pallas import tpu as pltpu

EPS = 1e-5


# ----------------------------------------------------------------------------
# Pass 1: per-channel sum / sum-of-squares partials, reduced over (N, H-tiles).
# ----------------------------------------------------------------------------
def bn_stats_kernel(x_ref, stats_ref):
    # x_ref:     [1, Cin, TH, W]  (one batch element, one row tile)
    # stats_ref: [2*Cin, W]       resident accumulator:
    #              rows [0, Cin)     -> per-channel column sums
    #              rows [Cin, 2*Cin) -> per-channel column sums of squares
    cin = x_ref.shape[1]

    @pl.when((pl.program_id(0) == 0) & (pl.program_id(1) == 0))
    def _init():
        stats_ref[...] = jnp.zeros_like(stats_ref)

    for c in range(cin):                       # Cin is small and static -> unrolled
        xc = x_ref[0, c]                       # [TH, W]
        stats_ref[c:c + 1, :] += jnp.sum(xc, axis=0, keepdims=True)
        stats_ref[cin + c:cin + c + 1, :] += jnp.sum(xc * xc, axis=0, keepdims=True)


# ----------------------------------------------------------------------------
# Pass 2: normalize + relu + 2x2 avg-pool + 1x1 conv (pool commuted first).
# ----------------------------------------------------------------------------
def transition_main_kernel(scale_ref, shift_ref, w_ref, pw_ref, x_ref, o_ref):
    # scale_ref, shift_ref: SMEM [1, Cin]     folded BN scale / shift
    # w_ref:                SMEM [Cout, Cin]  1x1 conv weights
    # pw_ref:               VMEM [W, W//2]    column-pool matrix (0.25 entries)
    # x_ref:                VMEM [1, Cin, TH, W]
    # o_ref:                VMEM [1, Cout, TH//2, W//2]
    cin = x_ref.shape[1]
    cout = o_ref.shape[1]
    pw = pw_ref[...]                           # hoisted, reused for all channels

    pooled = []
    for c in range(cin):
        xc = x_ref[0, c]                                            # [TH, W]
        yc = jnp.maximum(xc * scale_ref[0, c] + shift_ref[0, c], 0.0)
        hc = yc[0::2, :] + yc[1::2, :]                              # row pairs [TH//2, W]
        pooled.append(jnp.dot(hc, pw, preferred_element_type=jnp.float32))  # [TH//2, W//2]

    for o in range(cout):
        acc = pooled[0] * w_ref[o, 0]
        for c in range(1, cin):
            acc = acc + pooled[c] * w_ref[o, c]
        o_ref[0, o, :, :] = acc


# ----------------------------------------------------------------------------
# Wrapper
# ----------------------------------------------------------------------------
def _pick_tile_rows(H, W, Cin, budget_bytes=2 << 20):
    """Largest row tile that divides H, keeps (8,128)-legal blocks for both the
    input and the pooled output (tile_rows % 16 == 0 unless == H), and keeps a
    single input block under `budget_bytes` (double-buffering headroom)."""
    if Cin * H * W * 4 <= budget_bytes:
        return H
    cands = [t for t in range(16, H, 16)
             if H % t == 0 and Cin * t * W * 4 <= budget_bytes]
    if cands:
        return max(cands)
    return 16 if H % 16 == 0 else H  # TODO(synk): also tile W / channels for very large planes


def transition_forward(x_nchw, gamma, beta, conv_w, tile_rows=None):
    """x_nchw: [N, Cin, H, W] f32; conv_w: [Cout, Cin, 1, 1] (PyTorch layout)."""
    N, Cin, H, W = x_nchw.shape
    Cout = conv_w.shape[0]
    assert H % 2 == 0 and W % 2 == 0, "2x2 avg-pool needs even spatial dims"

    x = x_nchw.astype(jnp.float32)

    th = tile_rows if tile_rows is not None else _pick_tile_rows(H, W, Cin)
    assert H % th == 0 and (th == H or th % 16 == 0), (
        "tile_rows must divide H and (if < H) be a multiple of 16")
    grid = (N, H // th)

    # ---- pass 1: per-channel sum / sum-of-squares (single pass over x) ----
    stats = pl.pallas_call(
        bn_stats_kernel,
        out_shape=jax.ShapeDtypeStruct((2 * Cin, W), jnp.float32),
        grid=grid,
        in_specs=[pl.BlockSpec((1, Cin, th, W), lambda n, t: (n, 0, t, 0))],
        out_specs=pl.BlockSpec((2 * Cin, W), lambda n, t: (0, 0)),
        compiler_params=pltpu.CompilerParams(
            dimension_semantics=("arbitrary", "arbitrary")),
    )(x)

    # ---- fold BN into one scale/shift per channel (tiny [Cin]-sized math) ----
    count = jnp.float32(N * H * W)
    ch_sum = jnp.sum(stats[:Cin], axis=1)                       # [Cin]
    ch_sumsq = jnp.sum(stats[Cin:], axis=1)                     # [Cin]
    mean = ch_sum / count
    var = jnp.maximum(ch_sumsq / count - mean * mean, 0.0)      # biased variance
    inv_std = jax.lax.rsqrt(var + EPS)
    scale_v = gamma.astype(jnp.float32) * inv_std               # [Cin]
    shift_v = beta.astype(jnp.float32) - mean * scale_v         # [Cin]
    scale = scale_v.reshape(1, Cin)
    shift = shift_v.reshape(1, Cin)

    # ---- small constant operands ----
    w2 = conv_w.reshape(Cout, Cin).astype(jnp.float32)          # 1x1 conv weights
    pw = 0.25 * jnp.kron(jnp.eye(W // 2, dtype=jnp.float32),
                         jnp.ones((2, 1), jnp.float32))         # [W, W//2]

    # ---- pass 2: normalize + relu + pool + conv, pipelined over the grid ----
    out = pl.pallas_call(
        transition_main_kernel,
        out_shape=jax.ShapeDtypeStruct((N, Cout, H // 2, W // 2), jnp.float32),
        grid=grid,
        in_specs=[
            pl.BlockSpec(memory_space=pltpu.MemorySpace.SMEM),      # scale
            pl.BlockSpec(memory_space=pltpu.MemorySpace.SMEM),      # shift
            pl.BlockSpec(memory_space=pltpu.MemorySpace.SMEM),      # conv weights
            pl.BlockSpec((W, W // 2), lambda n, t: (0, 0)),         # pool matrix
            pl.BlockSpec((1, Cin, th, W), lambda n, t: (n, 0, t, 0)),
        ],
        out_specs=pl.BlockSpec((1, Cout, th // 2, W // 2),
                               lambda n, t: (n, 0, t, 0)),
        compiler_params=pltpu.CompilerParams(
            dimension_semantics=("parallel", "parallel")),
    )(scale, shift, w2, pw, x)

    return out


def transition_reference(x_nchw, gamma, beta, conv_w):
    """Pure-JAX reference mirroring the PyTorch forward (NCHW, training-mode BN)."""
    N, Cin, H, W = x_nchw.shape
    Cout = conv_w.shape[0]
    mean = jnp.mean(x_nchw, axis=(0, 2, 3), keepdims=True)
    var = jnp.mean((x_nchw - mean) ** 2, axis=(0, 2, 3), keepdims=True)
    y = (x_nchw - mean) / jnp.sqrt(var + EPS)
    y = y * gamma.reshape(1, Cin, 1, 1) + beta.reshape(1, Cin, 1, 1)
    y = jnp.maximum(y, 0.0)
    w = conv_w.reshape(Cout, Cin)
    z = jnp.einsum("nchw,oc->nohw", y, w)
    z = z.reshape(N, Cout, H // 2, 2, W // 2, 2).mean(axis=(3, 5))
    return z


if __name__ == "__main__":
    # CIFAR-DenseNet-style small shapes: in_planes=4, out_planes=2, 32x32 maps.
    # tile_rows=16 -> grid (N=2, H/16=2): exercises both batch and row tiling
    # (and the cross-tile BN-stats accumulation).
    N, Cin, H, W = 2, 4, 32, 32
    Cout = 2

    key = jax.random.PRNGKey(0)
    kx, kg, kb, kw = jax.random.split(key, 4)
    x = jax.random.normal(kx, (N, Cin, H, W), dtype=jnp.float32)
    gamma = jax.random.uniform(kg, (Cin,), dtype=jnp.float32, minval=0.5, maxval=1.5)
    beta = jax.random.normal(kb, (Cin,), dtype=jnp.float32) * 0.1
    conv_w = jax.random.normal(kw, (Cout, Cin, 1, 1), dtype=jnp.float32) * 0.5

    out = jax.block_until_ready(
        transition_forward(x, gamma, beta, conv_w, tile_rows=16))
    ref = jax.block_until_ready(transition_reference(x, gamma, beta, conv_w))

    assert out.shape == (N, Cout, H // 2, W // 2), out.shape
    assert jnp.allclose(out, ref, atol=1e-4, rtol=1e-4), float(jnp.max(jnp.abs(out - ref)))
    print("KERNEL_OK")
</pallas_src>

<mosaic_0001>
module attributes {stable_mosaic.version = 11 : i64} {
  func.func @bn_stats_kernel(%arg0: i32, %arg1: i32, %arg2: memref<1x4x16x32xf32, #tpu.memory_space<vmem>>, %arg3: memref<8x32xf32, #tpu.memory_space<vmem>>) attributes {dimension_semantics = [#tpu.dimension_semantics<arbitrary>, #tpu.dimension_semantics<arbitrary>], iteration_bounds = array<i64: 2, 2>, scalar_prefetch = 0 : i64, scratch_operands = 0 : i64, tpu.core_type = #tpu.core_type<tc>, window_params = [{transform_indices = @transform_0, window_bounds = array<i64: 1, 4, 16, 32>}, {pipeline_mode = #tpu.pipeline_mode<synchronous>, transform_indices = @transform_1, window_bounds = array<i64: 8, 32>}]} {
    %c0_i32 = arith.constant 0 : i32
    %0 = arith.cmpi eq, %arg0, %c0_i32 : i32
    %c0_i32_0 = arith.constant 0 : i32
    %1 = arith.cmpi eq, %arg1, %c0_i32_0 : i32
    %2 = arith.andi %0, %1 : i1
    %3 = arith.extui %2 : i1 to i32
    %c0_i32_1 = arith.constant 0 : i32
    %4 = arith.cmpi ne, %3, %c0_i32_1 : i32
    scf.if %4 {
      %cst_49 = arith.constant 0.000000e+00 : f32
      %57 = vector.broadcast %cst_49 : f32 to vector<8x32xf32>
      %c0_50 = arith.constant 0 : index
      %c0_51 = arith.constant 0 : index
      %58 = vector.load %arg3[%c0_50, %c0_51] : memref<8x32xf32, #tpu.memory_space<vmem>>, vector<8x32xf32>
      tpu.vector_store %arg3[%c0_50, %c0_51], %57 {strides = array<i32>} : memref<8x32xf32, #tpu.memory_space<vmem>>, vector<8x32xf32>,
    } else {
    }
    %c0 = arith.constant 0 : index
    %c0_2 = arith.constant 0 : index
    %c0_3 = arith.constant 0 : index
    %c0_4 = arith.constant 0 : index
    %5 = vector.load %arg2[%c0, %c0_2, %c0_3, %c0_4] : memref<1x4x16x32xf32, #tpu.memory_space<vmem>>, vector<1x1x16x32xf32>
    %6 = vector.shape_cast %5 : vector<1x1x16x32xf32> to vector<16x32xf32>
    %c0_5 = arith.constant 0 : index
    %c0_6 = arith.constant 0 : index
    %7 = vector.load %arg3[%c0_5, %c0_6] : memref<8x32xf32, #tpu.memory_space<vmem>>, vector<1x32xf32>
    %cst = arith.constant dense<0.000000e+00> : vector<32xf32>
    %8 = vector.multi_reduction <add>, %6, %cst [0] : vector<16x32xf32> to vector<32xf32>
    %9 = vector.shape_cast %8 : vector<32xf32> to vector<1x32xf32>
    %10 = arith.addf %7, %9 : vector<1x32xf32>
    %c0_7 = arith.constant 0 : index
    %c0_8 = arith.constant 0 : index
    %11 = vector.load %arg3[%c0_7, %c0_8] : memref<8x32xf32, #tpu.memory_space<vmem>>, vector<1x32xf32>
    tpu.vector_store %arg3[%c0_7, %c0_8], %10 {strides = array<i32>} : memref<8x32xf32, #tpu.memory_space<vmem>>, vector<1x32xf32>,
    %c4 = arith.constant 4 : index
    %c0_9 = arith.constant 0 : index
    %12 = vector.load %arg3[%c4, %c0_9] : memref<8x32xf32, #tpu.memory_space<vmem>>, vector<1x32xf32>
    %13 = arith.mulf %6, %6 : vector<16x32xf32>
    %cst_10 = arith.constant dense<0.000000e+00> : vector<32xf32>
    %14 = vector.multi_reduction <add>, %13, %cst_10 [0] : vector<16x32xf32> to vector<32xf32>
    %15 = vector.shape_cast %14 : vector<32xf32> to vector<1x32xf32>
    %16 = arith.addf %12, %15 : vector<1x32xf32>
    %c4_11 = arith.constant 4 : index
    %c0_12 = arith.constant 0 : index
    %17 = vector.load %arg3[%c4_11, %c0_12] : memref<8x32xf32, #tpu.memory_space<vmem>>, vector<1x32xf32>
    tpu.vector_store %arg3[%c4_11, %c0_12], %16 {strides = array<i32>} : memref<8x32xf32, #tpu.memory_space<vmem>>, vector<1x32xf32>,
    %c0_13 = arith.constant 0 : index
    %c1 = arith.constant 1 : index
    %c0_14 = arith.constant 0 : index
    %c0_15 = arith.constant 0 : index
    %18 = vector.load %arg2[%c0_13, %c1, %c0_14, %c0_15] : memref<1x4x16x32xf32, #tpu.memory_space<vmem>>, vector<1x1x16x32xf32>
    %19 = vector.shape_cast %18 : vector<1x1x16x32xf32> to vector<16x32xf32>
    %c1_16 = arith.constant 1 : index
    %c0_17 = arith.constant 0 : index
    %20 = vector.load %arg3[%c1_16, %c0_17] : memref<8x32xf32, #tpu.memory_space<vmem>>, vector<1x32xf32>
    %cst_18 = arith.constant dense<0.000000e+00> : vector<32xf32>
    %21 = vector.multi_reduction <add>, %19, %cst_18 [0] : vector<16x32xf32> to vector<32xf32>
    %22 = vector.shape_cast %21 : vector<32xf32> to vector<1x32xf32>
    %23 = arith.addf %20, %22 : vector<1x32xf32>
    %c1_19 = arith.constant 1 : index
    %c0_20 = arith.constant 0 : index
    %24 = vector.load %arg3[%c1_19, %c0_20] : memref<8x32xf32, #tpu.memory_space<vmem>>, vector<1x32xf32>
    tpu.vector_store %arg3[%c1_19, %c0_20], %23 {strides = array<i32>} : memref<8x32xf32, #tpu.memory_space<vmem>>, vector<1x32xf32>,
    %c5 = arith.constant 5 : index
    %c0_21 = arith.constant 0 : index
    %25 = vector.load %arg3[%c5, %c0_21] : memref<8x32xf32, #tpu.memory_space<vmem>>, vector<1x32xf32>
    %26 = arith.mulf %19, %19 : vector<16x32xf32>
    %cst_22 = arith.constant dense<0.000000e+00> : vector<32xf32>
    %27 = vector.multi_reduction <add>, %26, %cst_22 [0] : vector<16x32xf32> to vector<32xf32>
    %28 = vector.shape_cast %27 : vector<32xf32> to vector<1x32xf32>
    %29 = arith.addf %25, %28 : vector<1x32xf32>
    %c5_23 = arith.constant 5 : index
    %c0_24 = arith.constant 0 : index
    %30 = vector.load %arg3[%c5_23, %c0_24] : memref<8x32xf32, #tpu.memory_space<vmem>>, vector<1x32xf32>
    tpu.vector_store %arg3[%c5_23, %c0_24], %29 {strides = array<i32>} : memref<8x32xf32, #tpu.memory_space<vmem>>, vector<1x32xf32>,
    %c0_25 = arith.constant 0 : index
    %c2 = arith.constant 2 : index
    %c0_26 = arith.constant 0 : index
    %c0_27 = arith.constant 0 : index
    %31 = vector.load %arg2[%c0_25, %c2, %c0_26, %c0_27] : memref<1x4x16x32xf32, #tpu.memory_space<vmem>>, vector<1x1x16x32xf32>
    %32 = vector.shape_cast %31 : vector<1x1x16x32xf32> to vector<16x32xf32>
    %c2_28 = arith.constant 2 : index
    %c0_29 = arith.constant 0 : index
    %33 = vector.load %arg3[%c2_28, %c0_29] : memref<8x32xf32, #tpu.memory_space<vmem>>, vector<1x32xf32>
    %cst_30 = arith.constant dense<0.000000e+00> : vector<32xf32>
    %34 = vector.multi_reduction <add>, %32, %cst_30 [0] : vector<16x32xf32> to vector<32xf32>
    %35 = vector.shape_cast %34 : vector<32xf32> to vector<1x32xf32>
    %36 = arith.addf %33, %35 : vector<1x32xf32>
    %c2_31 = arith.constant 2 : index
    %c0_32 = arith.constant 0 : index
    %37 = vector.load %arg3[%c2_31, %c0_32] : memref<8x32xf32, #tpu.memory_space<vmem>>, vector<1x32xf32>
    tpu.vector_store %arg3[%c2_31, %c0_32], %36 {strides = array<i32>} : memref<8x32xf32, #tpu.memory_space<vmem>>, vector<1x32xf32>,
    %c6 = arith.constant 6 : index
    %c0_33 = arith.constant 0 : index
    %38 = vector.load %arg3[%c6, %c0_33] : memref<8x32xf32, #tpu.memory_space<vmem>>, vector<1x32xf32>
    %39 = arith.mulf %32, %32 : vector<16x32xf32>
    %cst_34 = arith.constant dense<0.000000e+00> : vector<32xf32>
    %40 = vector.multi_reduction <add>, %39, %cst_34 [0] : vector<16x32xf32> to vector<32xf32>
    %41 = vector.shape_cast %40 : vector<32xf32> to vector<1x32xf32>
    %42 = arith.addf %38, %41 : vector<1x32xf32>
    %c6_35 = arith.constant 6 : index
    %c0_36 = arith.constant 0 : index
    %43 = vector.load %arg3[%c6_35, %c0_36] : memref<8x32xf32, #tpu.memory_space<vmem>>, vector<1x32xf32>
    tpu.vector_store %arg3[%c6_35, %c0_36], %42 {strides = array<i32>} : memref<8x32xf32, #tpu.memory_space<vmem>>, vector<1x32xf32>,
    %c0_37 = arith.constant 0 : index
    %c3 = arith.constant 3 : index
    %c0_38 = arith.constant 0 : index
    %c0_39 = arith.constant 0 : index
    %44 = vector.load %arg2[%c0_37, %c3, %c0_38, %c0_39] : memref<1x4x16x32xf32, #tpu.memory_space<vmem>>, vector<1x1x16x32xf32>
    %45 = vector.shape_cast %44 : vector<1x1x16x32xf32> to vector<16x32xf32>
    %c3_40 = arith.constant 3 : index
    %c0_41 = arith.constant 0 : index
    %46 = vector.load %arg3[%c3_40, %c0_41] : memref<8x32xf32, #tpu.memory_space<vmem>>, vector<1x32xf32>
    %cst_42 = arith.constant dense<0.000000e+00> : vector<32xf32>
    %47 = vector.multi_reduction <add>, %45, %cst_42 [0] : vector<16x32xf32> to vector<32xf32>
    %48 = vector.shape_cast %47 : vector<32xf32> to vector<1x32xf32>
    %49 = arith.addf %46, %48 : vector<1x32xf32>
    %c3_43 = arith.constant 3 : index
    %c0_44 = arith.constant 0 : index
    %50 = vector.load %arg3[%c3_43, %c0_44] : memref<8x32xf32, #tpu.memory_space<vmem>>, vector<1x32xf32>
    tpu.vector_store %arg3[%c3_43, %c0_44], %49 {strides = array<i32>} : memref<8x32xf32, #tpu.memory_space<vmem>>, vector<1x32xf32>,
    %c7 = arith.constant 7 : index
    %c0_45 = arith.constant 0 : index
    %51 = vector.load %arg3[%c7, %c0_45] : memref<8x32xf32, #tpu.memory_space<vmem>>, vector<1x32xf32>
    %52 = arith.mulf %45, %45 : vector<16x32xf32>
    %cst_46 = arith.constant dense<0.000000e+00> : vector<32xf32>
    %53 = vector.multi_reduction <add>, %52, %cst_46 [0] : vector<16x32xf32> to vector<32xf32>
    %54 = vector.shape_cast %53 : vector<32xf32> to vector<1x32xf32>
    %55 = arith.addf %51, %54 : vector<1x32xf32>
    %c7_47 = arith.constant 7 : index
    %c0_48 = arith.constant 0 : index
    %56 = vector.load %arg3[%c7_47, %c0_48] : memref<8x32xf32, #tpu.memory_space<vmem>>, vector<1x32xf32>
    tpu.vector_store %arg3[%c7_47, %c0_48], %55 {strides = array<i32>} : memref<8x32xf32, #tpu.memory_space<vmem>>, vector<1x32xf32>,
    return
  }
  func.func @transform_0(%arg0: i32, %arg1: i32) -> (i32, i32, i32, i32) {
    %c0_i32 = arith.constant 0 : i32
    %c0_i32_0 = arith.constant 0 : i32
    %c0_i32_1 = arith.constant 0 : i32
    return %arg0, %c0_i32, %arg1, %c0_i32_0 : i32, i32, i32, i32
  }
  func.func @transform_1(%arg0: i32, %arg1: i32) -> (i32, i32) {
    %c0_i32 = arith.constant 0 : i32
    %c0_i32_0 = arith.constant 0 : i32
    %c0_i32_1 = arith.constant 0 : i32
    return %c0_i32, %c0_i32_0 : i32, i32
  }
}

</mosaic_0001>

<bundles_post_ra>
// kernel: tpu_custom_call.1
= control target key start
LH: loop header
LB: loop body
LE: loop exit
PB: predicated region body
PF: predicated region fallthrough
CT: control target
= control target key end

     0   :  { %6 = vsyncpa [#allocation3], 0  ;;  %s759_s0 = inlined_call_operand.hbm [shape: f32[2,4,32,32], index: 0, kind: input, shape index: {}]   ;;  %s760_s1 = inlined_call_operand.hbm [shape: f32[8,32], index: 1, kind: output, shape index: {}]  }
   0x1   :  { %8 = vsyncpa [#allocation3 + $0x1], 0 }
   0x2   :  { %9 = vsyncpa [#allocation4], 0  ;;  %s584_s6 = smov 0   ;;  %s586_s7 = smov 0  }
   0x3   :  { %s588_s8 = smov 0   ;;  %s590_s9 = smov 0  }
   0x4   :  { %s592_s10 = smov 0   ;;  %s594_s11 = smov 0  }
   0x5   :  { %s596_s12 = smov 0   ;;  %s598_s13 = smov 0  }
   0x6 LB: > { %s24_s14 = sadd.s32 1, %s556_s11  ;;  %s27_s15 = sadd.s32 1, %s560_s12  ;;  %s564_s13 = sphi %s598_s13, %s15_s13   ;;  %s560_s12 = sphi %s596_s12, %s770_s12   ;;  %s556_s11 = sphi %s594_s11, %s769_s11   ;;  %s552_s10 = sphi %s592_s10, %s768_s10   ;;  %s548_s9 = sphi %s590_s9, %s767_s9   ;;  %s544_s8 = sphi %s588_s8, %s766_s8   ;;  %s540_s7 = sphi %s586_s7, %s765_s7   ;;  %s536_s6 = sphi %s584_s6, %s764_s6  }
   0x7   : > { %p25_p0 = scmp.ge.s32.totalorder %s24_s14, 2  ;;  %s362_s16 = sadd.s32 4294967295, %s564_s13  }
   0x8   : > { %p43_p1 = scmp.ne.s32.totalorder %s544_s8, %s540_s7  ;;  %p44_p2 = scmp.eq.s32.totalorder %s564_s13, 0 }
   0x9   : > { %s772_s14 = smov (%p25_p0, %s24_s14), 0  ;;  %s774_s15 = smov (!%p25_p0, %s27_s15), %s560_s12 }
   0xa   : > { %s32_s17 = ssub.s32 %s556_s11, %s772_s14  ;;  %p29_p3 = scmp.ge.s32.totalorder %s774_s15, 2 }
   0xb   : > { %p49_p4 = scmp.ne.s32.totalorder %s540_s7, %s536_s6  ;;  %p634_p5 = por %p44_p2, %p43_p1 }
   0xc   : > { %p50_p6 = scmp.eq.s32.totalorder %s362_s16, 0  ;;  %s776_s15 = smov (%p29_p3, %s774_s15), 0 }
   0xd   : > { %s31_s20 = ssub.s32 %s560_s12, %s776_s15  ;;  %s36_s22 = sadd.s32 1, %s544_s8 }
   0xe   : > { %p642_p7 = por %p50_p6, %p49_p4  ;;  %s33_s21 = sor.u32 %s32_s17, %s31_s20 }
   0xf   : > { %p34_p8 = scmp.eq.s32.totalorder %s33_s21, 0  ;;  %p364_p9 = scmp.ge.s32.totalorder %s564_s13, 4 }
  0x11   : > { %s650_s23 = scalar_select %p34_p8, %s544_s8, %s36_s22  }
  0x12   : > { %90 = sbr.rel (%p364_p9) target bundleno = 39 (0x27), region = 16 }
  0x17   : > { %s94_s24 = sand.u32 1, %s544_s8   ;;  %s366_s25 = sshll.u32 %s556_s11, 1 }
  0x18   : > { %s365_s26 = sshll.u32 %s94_s24, 6  ;;  %s367_s27 = sshll.u32 %s560_s12, 4 }
  0x19   : > { %s104_s28 = sadd.s32 %s367_s27, %s366_s25  ;;  %s98_s29 = scalar_lea.vmem [#allocation2], %s365_s26 }
  0x1a   : > { %s119_s30 = sshll.u32 %s98_s29, 4  ;;  %s368_s2 = sshll.u32 %s104_s28, 7  ;;  %s120_s30 = int_to_ptr.vmem [resolvable:$true] %s119_s30 }
  0x1b   : > { %s383_s3 = scalar_select %p634_p5, [#allocation0], [#allocation8] }
  0x1c   : > { %s566_s4 = smov 512   ;;  %s567_s6 = smov 256  }
  0x1d   : > { %384 = sst [smem:[#allocation7]] (%p634_p5), %s566_s4  ;;  %s568_s17 = smov 2  }
  0x1e   : > { %s111_s5 = sld [smem:[%s383_s3]]   ;;  %s569_s20 = smov 128  }
  0x1f   : > { %385 = sst [smem:[#allocation7 + $0x1]] (%p634_p5), %s567_s6  ;;  %s106_s25 = scalar_lea.hbm %s759_s0, %s368_s2 }
  0x20   : > { %386 = sst [smem:[#allocation7 + $0x2]] (%p634_p5), %s568_s17  ;;  %s570_s26 = smov 8  }
  0x21   : > { %387 = sst [smem:[#allocation7 + $0x3]] (%p634_p5), %s569_s20  ;;  %s95_s29 = scalar_lea.sflag [#allocation3], %s94_s24 }
  0x22   : > { %388 = sst [smem:[#allocation7 + $0x4]] (%p634_p5), %s569_s20  ;;  %s571_s3 = smov 131072  }
  0x23   : > { %389 = sst [smem:[#allocation7 + $0x5]] (%p634_p5), %s570_s26 }
  0x24   : > { %s369_s27 = sshll.u32 %s111_s5, 26 }
  0x25   : > { %s370_s28 = sadd.s32 134217728, %s369_s27 }
  0x26   : > { %390 = dma.general (%p634_p5), %s106_s25, 1024, %s120_s30, %s95_s29, %s571_s3, [#allocation7], %s370_s28, 0  }
  0x27 PF: > { %p371_p10 = scmp.ge.s32.totalorder %s564_s13, 1  ;;  %p140_p11 = scmp.lt.s32.totalorder %s564_s13, 5 }
  0x29   : > { %p141_p12 = pnand %p371_p10, %p140_p11 }
  0x2a   : > { %s146_s2 = sand.u32 (!%p141_p12), 1, %s540_s7  }
  0x2b   : > { %144 = sbr.rel (%p141_p12) target bundleno = 98 (0x62), region = 24  ;;  %s372_s4 = sshll.u32 (!%p141_p12), %s146_s2, 6 }
  0x2c   : > { %s147_s6 = scalar_lea.sflag (!%p141_p12), [#allocation3], %s146_s2  ;;  %s678_s17 = scalar_lea.vmem (!%p141_p12), [#allocation2], %s372_s4 }
  0x30   : > { %527 = dma.done.wait (%p642_p7), %s147_s6, 1024  }
  0x31   : > { %529 = vsyncadd (%p642_p7), %s147_s6, 4294966272  ;;  %p165_p13 = scmp.eq.s32.totalorder %s552_s10, 0  ;;  %p166_p0 = scmp.eq.s32.totalorder %s548_s9, 0 }
  0x33   : > { %p167_p1 = pnand %p166_p0, %p165_p13 }
  0x35   : > { %170 = sbr.rel (%p167_p1) target bundleno = 60 (0x3c), region = 32 }
  0x3a   : > { %vm171_vm0 = vcmask 261120   ;;  %v572_v0 = vmov 0.0  }
  0x3b   : > { %172 = vst.msk [vmem:[#allocation5] sm:$0xff] %vm171_vm0, %v572_v0 }
  0x3c PF: > { %v173_v1 = vld [vmem:[%s678_s17] sm:$0xff]  ;;  %v174_v2 = vld [vmem:[%s678_s17 + $0x8] sm:$0xff]  ;;  %vm176_vm1 = vcmask 261120   ;;  %v373_v7 = vld [vmem:[%s678_s17 + $0x10] sm:$0xff]  ;;  %vm187_vm2 = vcmask 253952   ;;  %s573_s9 = smov [#allocation5]  }
  0x3d   : > { %v177_v3 = vsel %vm176_vm1, %v173_v1, 0.0  ;;  %v178_v4 = vsel %vm176_vm1, %v174_v2, 0.0  ;;  %v190_v5 = vmul.f32 %v173_v1, %v173_v1  ;;  %v191_v6 = vmul.f32 %v174_v2, %v174_v2  ;;  %v374_v8 = vld [vmem:[%s678_s17 + $0x18] sm:$0xff]  ;;  %v375_v17 = vld [vmem:[%s678_s17 + $0x20] sm:$0xff]  ;;  %v376_v21 = vld [vmem:[%s678_s17 + $0x28] sm:$0xff]  ;;  %s297_s10 = sshll.u32 %s573_s9, 4  ;;  %s298_s10 = int_to_ptr.vmem [resolvable:$true] %s297_s10 }
  0x3e   : > { %v179_v9 = vadd.f32 %v178_v4, %v177_v3  ;;  %v207_v10 = vsel %vm176_vm1, %v373_v7, 0.0  ;;  %v208_v11 = vsel %vm176_vm1, %v374_v8, 0.0  ;;  %v219_v12 = vmul.f32 %v373_v7, %v373_v7  ;;  %v377_v31 = vld [vmem:[%s678_s17 + $0x30] sm:$0xff]  ;;  %v378_v40 = vld [vmem:[%s678_s17 + $0x38] sm:$0xff]  ;;  %p719_p2 = scmp.eq.s32.totalorder %s362_s16, 3  ;;  %s470_s19 = scalar_lea.vmem %s298_s10, 128 }
  0x3f   : > { %v192_v13 = vsel %vm176_vm1, %v190_v5, 0.0  ;;  %v193_v14 = vsel %vm176_vm1, %v191_v6, 0.0  ;;  %v209_v15 = vadd.f32 %v208_v11, %v207_v10  ;;  %v220_v16 = vmul.f32 %v374_v8, %v374_v8  ;;  %p471_p3 = scmp.ne.s32.totalorder %s298_s10, %s470_s19  ;;  %p477_p6 = scmp.lt.s32.totalorder %s298_s10, %s298_s10 }
  0x40   : > { %v180_v18 = vrot.slane %v179_v9, 4  ;;  %v194_v19 = vadd.f32 %v193_v14, %v192_v13  ;;  %v221_v20 = vsel %vm176_vm1, %v219_v12, 0.0  ;;  %v236_v22 = vsel %vm176_vm1, %v375_v17, 0.0  ;;  %p478_p7 = scmp.lt.s32.totalorder %s470_s19, %s470_s19 }
  0x41   : > { %v210_v23 = vrot.slane %v209_v15, 4  ;;  %v222_v24 = vsel %vm176_vm1, %v220_v16, 0.0  ;;  %v237_v25 = vsel %vm176_vm1, %v376_v21, 0.0  ;;  %v248_v26 = vmul.f32 %v375_v17, %v375_v17  ;;  %p472_p4 = pnand %p471_p3, %p719_p2 }
  0x42   : > { %v181_v27 = vadd.f32 %v180_v18, %v179_v9  ;;  %v195_v28 = vrot.slane %v194_v19, 4  ;;  %v223_v29 = vadd.f32 %v222_v24, %v221_v20  ;;  %v238_v30 = vadd.f32 %v237_v25, %v236_v22  ;;  %v175_v57 = vld [vmem:[#allocation5] sm:$0x1]  ;;  %v206_v0 = vld [vmem:[#allocation5 + $0x1] sm:$0x1]  ;;  %p479_p8 = por %p478_p7, %p477_p6 }
  0x43   : > { %v211_v32 = vadd.f32 %v210_v23, %v209_v15  ;;  %v249_v33 = vmul.f32 %v376_v21, %v376_v21  ;;  %v250_v34 = vsel %vm176_vm1, %v248_v26, 0.0  ;;  %v265_v35 = vsel %vm176_vm1, %v377_v31, 0.0  ;;  %v189_v3 = vld [vmem:[#allocation5 + $0x4] sm:$0x1]  ;;  %v218_v13 = vld [vmem:[#allocation5 + $0x5] sm:$0x1]  ;;  %p473_p5 = pneg %p472_p4 }
  0x44   : > { %v182_v36 = vrot.slane %v181_v27, 2  ;;  %v196_v37 = vadd.f32 %v195_v28, %v194_v19  ;;  %v224_v38 = vrot.slane %v223_v29, 4  ;;  %v239_v39 = vrot.slane %v238_v30, 4  ;;  %v235_v14 = vld [vmem:[#allocation5 + $0x2] sm:$0x1] }
  0x45   : > { %v212_v41 = vrot.slane %v211_v32, 2  ;;  %v251_v42 = vsel %vm176_vm1, %v249_v33, 0.0  ;;  %v266_v43 = vsel %vm176_vm1, %v378_v40, 0.0  ;;  %v277_v44 = vmul.f32 %v377_v31, %v377_v31  ;;  %p480_p9 = pnand %p479_p8, %p473_p5 }
  0x46   : > { %v183_v45 = vadd.f32 %v182_v36, %v181_v27  ;;  %v197_v46 = vrot.slane %v196_v37, 2  ;;  %v225_v47 = vadd.f32 %v224_v38, %v223_v29  ;;  %v240_v48 = vadd.f32 %v239_v39, %v238_v30  ;;  %v247_v29 = vld [vmem:[#allocation5 + $0x6] sm:$0x1]  ;;  %v264_v30 = vld [vmem:[#allocation5 + $0x3] sm:$0x1] }
  0x47   : > { %v213_v49 = vadd.f32 %v212_v41, %v211_v32  ;;  %v252_v50 = vadd.f32 %v251_v42, %v250_v34  ;;  %v267_v51 = vadd.f32 %v266_v43, %v265_v35  ;;  %v278_v52 = vmul.f32 %v378_v40, %v378_v40  ;;  %v276_v38 = vld [vmem:[#allocation5 + $0x7] sm:$0x1] }
  0x48   : > { %v184_v53 = vrot.slane %v183_v45, 1  ;;  %v198_v54 = vadd.f32 %v197_v46, %v196_v37  ;;  %v226_v55 = vrot.slane %v225_v47, 2  ;;  %v241_v56 = vrot.slane %v240_v48, 2 }
  0x49   : > { %v214_v58 = vrot.slane %v213_v49, 1  ;;  %v253_v59 = vrot.slane %v252_v50, 4  ;;  %v268_v60 = vrot.slane %v267_v51, 4  ;;  %v279_v61 = vsel %vm176_vm1, %v277_v44, 0.0 }
  0x4a   : > { %v185_v62 = vadd.f32 %v184_v53, %v183_v45  ;;  %v199_v63 = vrot.slane %v198_v54, 1  ;;  %v227_v1 = vadd.f32 %v226_v55, %v225_v47  ;;  %v242_v2 = vadd.f32 %v241_v56, %v240_v48 }
  0x4b   : > { %v215_v4 = vadd.f32 %v214_v58, %v213_v49  ;;  %v254_v5 = vadd.f32 %v253_v59, %v252_v50  ;;  %v269_v6 = vadd.f32 %v268_v60, %v267_v51  ;;  %v280_v7 = vsel %vm176_vm1, %v278_v52, 0.0 }
  0x4c   : > { %v186_v8 = vadd.f32 %v185_v62, %v175_v57  ;;  %v200_v9 = vadd.f32 %v199_v63, %v198_v54  ;;  %v228_v10 = vrot.slane %v227_v1, 1  ;;  %v243_v11 = vrot.slane %v242_v2, 1 }
  0x4d   : > { %v216_v12 = vadd.f32 %v215_v4, %v206_v0  ;;  %v255_v15 = vrot.slane %v254_v5, 2  ;;  %v270_v16 = vrot.slane %v269_v6, 2  ;;  %v281_v17 = vadd.f32 %v280_v7, %v279_v61 }
  0x4e   : > { %188 = vst.msk [vmem:[#allocation5] sm:$0x1] %vm187_vm2, %v186_v8  ;;  %v201_v18 = vadd.f32 %v200_v9, %v189_v3  ;;  %v229_v19 = vadd.f32 %v228_v10, %v227_v1  ;;  %v244_v20 = vadd.f32 %v243_v11, %v242_v2 }
  0x4f   : > { %217 = vst.msk [vmem:[#allocation5 + $0x1] sm:$0x1] %vm187_vm2, %v216_v12  ;;  %v256_v21 = vadd.f32 %v255_v15, %v254_v5  ;;  %v271_v22 = vadd.f32 %v270_v16, %v269_v6  ;;  %v282_v23 = vrot.slane %v281_v17, 4 }
  0x50   : > { %202 = vst.msk [vmem:[#allocation5 + $0x4] sm:$0x1] %vm187_vm2, %v201_v18  ;;  %v230_v24 = vadd.f32 %v229_v19, %v218_v13  ;;  %v245_v25 = vadd.f32 %v244_v20, %v235_v14 }
  0x51   : > { %v257_v26 = vrot.slane %v256_v21, 1  ;;  %v272_v27 = vrot.slane %v271_v22, 1  ;;  %v283_v28 = vadd.f32 %v282_v23, %v281_v17 }
  0x52   : > { %231 = vst.msk [vmem:[#allocation5 + $0x5] sm:$0x1] %vm187_vm2, %v230_v24  ;;  %246 = vst.msk [vmem:[#allocation5 + $0x2] sm:$0x1] %vm187_vm2, %v245_v25 }
  0x53   : > { %v258_v31 = vadd.f32 %v257_v26, %v256_v21  ;;  %v273_v32 = vadd.f32 %v272_v27, %v271_v22  ;;  %v284_v33 = vrot.slane %v283_v28, 2 }
  0x55   : > { %v259_v34 = vadd.f32 %v258_v31, %v247_v29  ;;  %v274_v35 = vadd.f32 %v273_v32, %v264_v30  ;;  %v285_v36 = vadd.f32 %v284_v33, %v283_v28 }
  0x57   : > { %260 = vst.msk [vmem:[#allocation5 + $0x6] sm:$0x1] %vm187_vm2, %v259_v34  ;;  %275 = vst.msk [vmem:[#allocation5 + $0x3] sm:$0x1] %vm187_vm2, %v274_v35  ;;  %v286_v37 = vrot.slane %v285_v36, 1 }
  0x59   : > { %v287_v39 = vadd.f32 %v286_v37, %v285_v36 }
  0x5b   : > { %v288_v40 = vadd.f32 %v287_v39, %v276_v38 }
  0x5d   : > { %289 = vst.msk [vmem:[#allocation5 + $0x7] sm:$0x1] %vm187_vm2, %v288_v40 }
  0x5e   : > { %483 = shalt.err (!%p480_p9)
}
  0x5f   : > { %393 = dma.vmem_to_hbm [thread:$0]  (%p719_p2), %s298_s10, 128, %s760_s1, [#allocation4]  }
  0x60   : > { %531 = dma.done.wait (%p719_p2), [#allocation4], 128  }
  0x61   : > { %533 = vsyncadd (%p719_p2), [#allocation4], 4294967168 }
  0x62 PF: > { %s15_s13 = sadd.s32 1, %s564_s13   ;;  %s764_s6 = smov %s540_s7 }
  0x63   : > { %p12_p10 = scmp.ge.s32.totalorder %s15_s13, 6   ;;  %s765_s7 = smov %s544_s8 }
  0x64   : > { %s766_s8 = smov %s650_s23  ;;  %s767_s9 = smov %s556_s11 }
  0x65   : > { %s768_s10 = smov %s560_s12  ;;  %s769_s11 = smov %s772_s14 }
  0x66   : > { %s770_s12 = smov %s776_s15  ;;  %14 = sbr.rel (!%p12_p10) target bundleno = 6 (0x6), region = 73 }
  0x6b   :  { %310 = vsyncpa [#allocation3], 1 }
  0x6c   :  { %312 = vsyncpa [#allocation3 + $0x1], 1 }
  0x6d   :  { %313 = vsyncpa [#allocation4], 1 }
  0x6e   :  { %315 = vsyncpa [#allocation4 + $0x1], 1 }

</bundles_post_ra>
